<compile_context>
chip_gen: v7x
topology: tpu7x:2x2x1
jax: 0.10.0
libtpu: 0.0.40
codegen_flags: <defaults>
</compile_context>

<pallas_src>
import functools

import jax
import jax.numpy as jnp
from jax.experimental import pallas as pl
from jax.experimental.pallas import tpu as pltpu

_LANE = 128


def _round_up(v, m):
    return -(-v // m) * m


def _full_spec(shape):
    # Whole-array block (block_shape == array dims is always layout-legal).
    return pl.BlockSpec(shape, lambda: (0,) * len(shape))


# ------------------------------- kernel ------------------------------------ #

def _gcn_fused_kernel(*refs, num_gc, num_fc, inv_n, use_bf16):
    """Entire GCN forward in one kernel; H stays resident on-chip.

    refs layout: x, A, wgc_0..wgc_{num_gc-1}, wfc_0..wfc_{num_fc-1}, out.
    All inputs already arrive in the compute dtype (bf16 or f32); all
    accumulation and elementwise math is f32.
    """
    cdt = jnp.bfloat16 if use_bf16 else jnp.float32

    x_ref = refs[0]
    a_ref = refs[1]
    wgc_refs = refs[2:2 + num_gc]
    wfc_refs = refs[2 + num_gc:2 + num_gc + num_fc]
    o_ref = refs[2 + num_gc + num_fc]

    a = a_ref[...]                                   # (Np, Np), compute dtype
    h_c = x_ref[...]                                 # (Np, Pin), compute dtype
    h = h_c.astype(jnp.float32)

    # Graph-convolution stack: H <- relu(A @ (H @ Wgc_i)).
    for i in range(num_gc):
        w = wgc_refs[i][...]                         # (Pin_i, Pout_i), cdt
        hw = jnp.dot(h_c, w, preferred_element_type=jnp.float32)
        h = jnp.dot(a, hw.astype(cdt), preferred_element_type=jnp.float32)
        h = jnp.maximum(h, 0.0)                      # relu in f32 (VPU)
        h_c = h.astype(cdt)

    if num_fc == 0:
        # Reference module returns the full H when there are no FC layers.
        o_ref[...] = h.astype(o_ref.dtype)
        return

    # Mean pooling over the real node rows (padding rows are exact zeros).
    pooled = jnp.sum(h, axis=0, keepdims=True) * inv_n       # (1, P) f32
    p_c = pooled.astype(cdt)

    # Fully connected stack.  Activation gate intentionally uses num_gc - 1
    # (quirk of the reference module: `i < self.num_gc_layers - 1`).
    for i in range(num_fc):
        w = wfc_refs[i][...]
        out = jnp.dot(p_c, w, preferred_element_type=jnp.float32)
        if i < num_gc - 1:
            out = jnp.maximum(out, 0.0)
        p_c = out.astype(cdt)
        pooled = out

    o_ref[...] = pooled.astype(o_ref.dtype)


# ------------------------------ wrappers ------------------------------------ #

def prepare_params(params, *, use_bf16=False):
    """One-time prep: transpose nn.Linear weights (out, in) -> (in, out),
    zero-pad each weight independently to lane-multiples (per-stage padding),
    and cast to the compute dtype on the host."""
    cdt = jnp.bfloat16 if use_bf16 else jnp.float32

    def pad_t(w):
        wt = jnp.asarray(w, jnp.float32).T                    # (in, out)
        pi = _round_up(wt.shape[0], _LANE)
        po = _round_up(wt.shape[1], _LANE)
        return jnp.pad(wt, ((0, pi - wt.shape[0]),
                            (0, po - wt.shape[1]))).astype(cdt)

    wgc = [pad_t(w) for w in params["gc_weights"]]
    wfc = [pad_t(w) for w in params["fc_weights"]]
    return {
        "wgc": wgc,
        "wfc": wfc,
        "use_bf16": use_bf16,
        "dtype": cdt,
        "p_in": wgc[0].shape[0],
        "gc_out_dim": params["gc_weights"][-1].shape[0],
        "out_dim": (params["fc_weights"][-1].shape[0]
                    if params["fc_weights"]
                    else params["gc_weights"][-1].shape[0]),
    }


def prepare_graph(adjacency, *, dtype=jnp.float32):
    """One-time prep of the (static) adjacency: pad N to a lane multiple and
    cast to the compute dtype, so no per-forward N^2 pad/cast XLA op runs."""
    n = adjacency.shape[0]
    n_pad = _round_up(n, _LANE)
    a_p = jnp.pad(jnp.asarray(adjacency, jnp.float32),
                  ((0, n_pad - n), (0, n_pad - n))).astype(dtype)
    return {"a_p": a_p, "n": n, "n_pad": n_pad}


def _vmem_limit_bytes(arrays, extra_f32_elems):
    """Generation-aware VMEM budget: actual buffer bytes + headroom, capped at
    7/8 of the physical VMEM (v5e/v6e: 128 MiB, v7x: 64 MiB)."""
    buf = sum(int(a.size) * a.dtype.itemsize for a in arrays)
    buf += int(extra_f32_elems) * 4
    try:
        cap = int(pltpu.get_tpu_info().vmem_capacity_bytes)
    except Exception:                                 # pragma: no cover
        cap = 64 << 20                                # conservative (v7x)
    return int(min(max(buf + (4 << 20), 32 << 20), cap * 7 // 8))


def gcn_forward(x, graph, prepared):
    """Fused Pallas forward of GraphConvolutionalNetwork (no residual)."""
    cdt = prepared["dtype"]
    n, n_pad, a_p = graph["n"], graph["n_pad"], graph["a_p"]
    p_in = prepared["p_in"]
    f_in = x.shape[1]

    x_p = jnp.pad(jnp.asarray(x, jnp.float32),
                  ((0, n_pad - n), (0, p_in - f_in))).astype(cdt)

    wgc, wfc = prepared["wgc"], prepared["wfc"]
    num_gc, num_fc = len(wgc), len(wfc)

    if num_fc > 0:
        out_pad_shape = (1, wfc[-1].shape[1])
    else:
        out_pad_shape = (n_pad, wgc[-1].shape[1])

    inputs = [x_p, a_p] + wgc + wfc
    in_specs = [_full_spec(a.shape) for a in inputs]

    # Rough bound on on-chip f32 intermediates (h, hw + narrow copies).
    max_p = max(w.shape[1] for w in wgc)
    extra_f32 = 4 * n_pad * max_p + out_pad_shape[0] * out_pad_shape[1]
    vmem_limit = _vmem_limit_bytes(inputs, extra_f32)

    kernel = functools.partial(
        _gcn_fused_kernel, num_gc=num_gc, num_fc=num_fc,
        inv_n=1.0 / n, use_bf16=prepared["use_bf16"])

    out = pl.pallas_call(
        kernel,
        out_shape=jax.ShapeDtypeStruct(out_pad_shape, jnp.float32),
        in_specs=in_specs,
        out_specs=_full_spec(out_pad_shape),
        compiler_params=pltpu.CompilerParams(vmem_limit_bytes=vmem_limit),
    )(*inputs)

    if num_fc > 0:
        return out[0, :prepared["out_dim"]]
    return out[:n, :prepared["gc_out_dim"]]


def gcn_reference(x, adjacency, params):
    """Plain-JAX reference mirroring the PyTorch module exactly."""
    h = x
    for w in params["gc_weights"]:
        h = jnp.maximum(adjacency @ (h @ w.T), 0.0)
    num_gc_layers = len(params["gc_weights"])
    if params["fc_weights"]:
        h = jnp.mean(h, axis=0)
        for i, w in enumerate(params["fc_weights"]):
            h = h @ w.T
            if i < num_gc_layers - 1:
                h = jnp.maximum(h, 0.0)
    return h


def init_params(key, in_features, gc_hidden_sizes, fc_hidden_sizes):
    """Deterministic synthetic params; nn.Linear(bias=False) weight is (out, in)."""
    params = {"gc_weights": [], "fc_weights": []}
    prev = in_features
    for h in gc_hidden_sizes:
        key, sub = jax.random.split(key)
        params["gc_weights"].append(
            jax.random.normal(sub, (h, prev), dtype=jnp.float32) * 0.1)
        prev = h
    prev = gc_hidden_sizes[-1]
    # The module builds num_gc_layers FC layers (faithful to the source).
    for i in range(len(gc_hidden_sizes)):
        h = fc_hidden_sizes[i]
        key, sub = jax.random.split(key)
        params["fc_weights"].append(
            jax.random.normal(sub, (h, prev), dtype=jnp.float32) * 0.1)
        prev = h
    return params


if __name__ == "__main__":
    # Small deterministic problem: 8 graph nodes, 16 input features.
    num_nodes = 8
    in_features = 16
    gc_hidden_sizes = [32, 32]
    fc_hidden_sizes = [32, 16]

    key = jax.random.PRNGKey(0)
    k_x, k_a, k_p = jax.random.split(key, 3)

    x = jax.random.normal(k_x, (num_nodes, in_features), dtype=jnp.float32)
    adjacency = jax.random.uniform(k_a, (num_nodes, num_nodes),
                                   dtype=jnp.float32)
    adjacency = 0.5 * (adjacency + adjacency.T)  # symmetric, like a graph

    params = init_params(k_p, in_features, gc_hidden_sizes, fc_hidden_sizes)
    ref = gcn_reference(x, adjacency, params)

    # --- exact f32 path (tight tolerance) -------------------------------- #
    prep_f32 = prepare_params(params, use_bf16=False)
    graph_f32 = prepare_graph(adjacency, dtype=prep_f32["dtype"])
    out_f32 = jax.block_until_ready(gcn_forward(x, graph_f32, prep_f32))
    assert out_f32.shape == (fc_hidden_sizes[-1],), out_f32.shape
    assert jnp.allclose(out_f32, ref, rtol=1e-5, atol=1e-5), (out_f32, ref)

    # --- production bf16-operand path (f32 accumulation) ------------------ #
    # bf16 operands quantize A / x / W, so tolerances are necessarily loose.
    prep_bf16 = prepare_params(params, use_bf16=True)
    graph_bf16 = prepare_graph(adjacency, dtype=prep_bf16["dtype"])
    out_bf16 = jax.block_until_ready(gcn_forward(x, graph_bf16, prep_bf16))
    assert out_bf16.shape == (fc_hidden_sizes[-1],), out_bf16.shape
    assert jnp.allclose(out_bf16, ref, rtol=1e-1, atol=1e-1), (out_bf16, ref)

    print("KERNEL_OK")
</pallas_src>

<mosaic_0001>
module attributes {stable_mosaic.version = 11 : i64} {
  func.func @_gcn_fused_kernel(%arg0: memref<128x128xf32, #tpu.memory_space<vmem>>, %arg1: memref<128x128xf32, #tpu.memory_space<vmem>>, %arg2: memref<128x128xf32, #tpu.memory_space<vmem>>, %arg3: memref<128x128xf32, #tpu.memory_space<vmem>>, %arg4: memref<128x128xf32, #tpu.memory_space<vmem>>, %arg5: memref<128x128xf32, #tpu.memory_space<vmem>>, %arg6: memref<1x128xf32, #tpu.memory_space<vmem>>) attributes {dimension_semantics = [], scalar_prefetch = 0 : i64, scratch_operands = 0 : i64, tpu.core_type = #tpu.core_type<tc>} {
    %c0 = arith.constant 0 : index
    %c0_0 = arith.constant 0 : index
    %0 = vector.load %arg1[%c0, %c0_0] : memref<128x128xf32, #tpu.memory_space<vmem>>, vector<128x128xf32>
    %c0_1 = arith.constant 0 : index
    %c0_2 = arith.constant 0 : index
    %1 = vector.load %arg0[%c0_1, %c0_2] : memref<128x128xf32, #tpu.memory_space<vmem>>, vector<128x128xf32>
    %c0_3 = arith.constant 0 : index
    %c0_4 = arith.constant 0 : index
    %2 = vector.load %arg2[%c0_3, %c0_4] : memref<128x128xf32, #tpu.memory_space<vmem>>, vector<128x128xf32>
    %cst = arith.constant dense<0.000000e+00> : vector<128x128xf32>
    %3 = tpu.matmul %1, %2, %cst {dimension_numbers = #tpu.dot_dimension_numbers<[1], [0], [0], [1], [0, 0, 1, 1], [], []>} : vector<128x128xf32>, vector<128x128xf32>, vector<128x128xf32> -> vector<128x128xf32>
    %cst_5 = arith.constant dense<0.000000e+00> : vector<128x128xf32>
    %4 = tpu.matmul %0, %3, %cst_5 {dimension_numbers = #tpu.dot_dimension_numbers<[1], [0], [0], [1], [0, 0, 1, 1], [], []>} : vector<128x128xf32>, vector<128x128xf32>, vector<128x128xf32> -> vector<128x128xf32>
    %cst_6 = arith.constant 0.000000e+00 : f32
    %5 = vector.broadcast %cst_6 : f32 to vector<128x128xf32>
    %6 = arith.maximumf %4, %5 : vector<128x128xf32>
    %c0_7 = arith.constant 0 : index
    %c0_8 = arith.constant 0 : index
    %7 = vector.load %arg3[%c0_7, %c0_8] : memref<128x128xf32, #tpu.memory_space<vmem>>, vector<128x128xf32>
    %cst_9 = arith.constant dense<0.000000e+00> : vector<128x128xf32>
    %8 = tpu.matmul %6, %7, %cst_9 {dimension_numbers = #tpu.dot_dimension_numbers<[1], [0], [0], [1], [0, 0, 1, 1], [], []>} : vector<128x128xf32>, vector<128x128xf32>, vector<128x128xf32> -> vector<128x128xf32>
    %cst_10 = arith.constant dense<0.000000e+00> : vector<128x128xf32>
    %9 = tpu.matmul %0, %8, %cst_10 {dimension_numbers = #tpu.dot_dimension_numbers<[1], [0], [0], [1], [0, 0, 1, 1], [], []>} : vector<128x128xf32>, vector<128x128xf32>, vector<128x128xf32> -> vector<128x128xf32>
    %cst_11 = arith.constant 0.000000e+00 : f32
    %10 = vector.broadcast %cst_11 : f32 to vector<128x128xf32>
    %11 = arith.maximumf %9, %10 : vector<128x128xf32>
    %cst_12 = arith.constant dense<0.000000e+00> : vector<128xf32>
    %12 = vector.multi_reduction <add>, %11, %cst_12 [0] : vector<128x128xf32> to vector<128xf32>
    %13 = vector.shape_cast %12 : vector<128xf32> to vector<1x128xf32>
    %cst_13 = arith.constant 1.250000e-01 : f32
    %14 = vector.broadcast %cst_13 : f32 to vector<1x128xf32>
    %15 = arith.mulf %13, %14 : vector<1x128xf32>
    %c0_14 = arith.constant 0 : index
    %c0_15 = arith.constant 0 : index
    %16 = vector.load %arg4[%c0_14, %c0_15] : memref<128x128xf32, #tpu.memory_space<vmem>>, vector<128x128xf32>
    %cst_16 = arith.constant dense<0.000000e+00> : vector<1x128xf32>
    %17 = tpu.matmul %15, %16, %cst_16 {dimension_numbers = #tpu.dot_dimension_numbers<[1], [0], [0], [1], [0, 0, 1, 1], [], []>} : vector<1x128xf32>, vector<128x128xf32>, vector<1x128xf32> -> vector<1x128xf32>
    %cst_17 = arith.constant 0.000000e+00 : f32
    %18 = vector.broadcast %cst_17 : f32 to vector<1x128xf32>
    %19 = arith.maximumf %17, %18 : vector<1x128xf32>
    %c0_18 = arith.constant 0 : index
    %c0_19 = arith.constant 0 : index
    %20 = vector.load %arg5[%c0_18, %c0_19] : memref<128x128xf32, #tpu.memory_space<vmem>>, vector<128x128xf32>
    %cst_20 = arith.constant dense<0.000000e+00> : vector<1x128xf32>
    %21 = tpu.matmul %19, %20, %cst_20 {dimension_numbers = #tpu.dot_dimension_numbers<[1], [0], [0], [1], [0, 0, 1, 1], [], []>} : vector<1x128xf32>, vector<128x128xf32>, vector<1x128xf32> -> vector<1x128xf32>
    %c0_21 = arith.constant 0 : index
    %c0_22 = arith.constant 0 : index
    %22 = vector.load %arg6[%c0_21, %c0_22] : memref<1x128xf32, #tpu.memory_space<vmem>>, vector<1x128xf32>
    tpu.vector_store %arg6[%c0_21, %c0_22], %21 {strides = array<i32>} : memref<1x128xf32, #tpu.memory_space<vmem>>, vector<1x128xf32>,
    return
  }
}

</mosaic_0001>

<bundles_post_ra>
// kernel: tpu_custom_call.1
= control target key start
LH: loop header
LB: loop body
LE: loop exit
PB: predicated region body
PF: predicated region fallthrough
CT: control target
= control target key end

     0   :  { %11 = vsyncpa [#allocation3], 0  ;;  %s2054_s0 = inlined_call_operand.hbm [shape: f32[128,128], index: 0, kind: input, shape index: {}]   ;;  %s2055_s1 = inlined_call_operand.hbm [shape: f32[128,128], index: 1, kind: input, shape index: {}]   ;;  %s2056_s2 = inlined_call_operand.hbm [shape: f32[128,128], index: 2, kind: input, shape index: {}]   ;;  %s2057_s3 = inlined_call_operand.hbm [shape: f32[128,128], index: 3, kind: input, shape index: {}]   ;;  %s2058_s4 = inlined_call_operand.hbm [shape: f32[128,128], index: 4, kind: input, shape index: {}]   ;;  %s2059_s5 = inlined_call_operand.hbm [shape: f32[128,128], index: 5, kind: input, shape index: {}]   ;;  %s2060_s6 = inlined_call_operand.hbm [shape: f32[1,128], index: 6, kind: output, shape index: {}]  }
   0x1   :  { %12 = vsyncpa [#allocation6], 0 }
   0x2   :  { %13 = vsyncpa [#allocation9], 0 }
   0x3   :  { %14 = vsyncpa [#allocation12], 0 }
   0x4   :  { %15 = vsyncpa [#allocation4], 0  ;;  %s1804_s21 = smov [#allocation5]   ;;  %s1805_s23 = smov [#allocation8]  }
   0x5   :  { %s33_s22 = sshll.u32 %s1804_s21, 4  ;;  %s57_s24 = sshll.u32 %s1805_s23, 4  ;;  %s34_s22 = int_to_ptr.vmem [resolvable:$true] %s33_s22  ;;  %s1851_s24 = int_to_ptr.vmem [resolvable:$true] %s57_s24 }
   0x6   :  { %s1640_s27 = scalar_lea.hbm %s2055_s1, 2048 }
   0x7   :  { %p1641_p0 = scmp.ne.s32.totalorder %s2055_s1, %s1640_s27  ;;  %p1644_p1 = scmp.lt.u32.totalorder %s1640_s27, %s2055_s1 }
   0x9   :  { %p1646_p2 = pnand %p1644_p1, %p1641_p0 }
   0xb   :  { %1649 = shalt.err (!%p1646_p2)
}
   0xc   :  { %s1650_s8 = scalar_lea.vmem %s34_s22, 2048  ;;  %p1655_p4 = scmp.lt.s32.totalorder %s34_s22, %s34_s22 }
   0xd   :  { %p1651_p3 = scmp.ne.s32.totalorder %s34_s22, %s1650_s8  ;;  %p1656_p5 = scmp.lt.s32.totalorder %s1650_s8, %s1650_s8 }
   0xf   :  { %p1657_p6 = por %p1656_p5, %p1655_p4 }
  0x11   :  { %p1658_p7 = pnand %p1657_p6, %p1651_p3 }
  0x13   :  { %1661 = shalt.err (!%p1658_p7)
}
  0x14   :  { %s1806_s9 = smov 128   ;;  %s1807_s10 = smov 8  }
  0x15   :  { %39 = dma.hbm_to_vmem [thread:$0]  %s2055_s1, 2048, %s34_s22, [#allocation6], %s1806_s9, %s1806_s9, %s1807_s10  }
  0x16   :  { %s1662_s15 = scalar_lea.hbm %s2057_s3, 2048 }
  0x17   :  { %p1663_p8 = scmp.ne.s32.totalorder %s2057_s3, %s1662_s15  ;;  %p1666_p9 = scmp.lt.u32.totalorder %s1662_s15, %s2057_s3 }
  0x19   :  { %p1668_p10 = pnand %p1666_p9, %p1663_p8 }
  0x1b   :  { %1671 = shalt.err (!%p1668_p10)
}
  0x1c   :  { %s1672_s20 = scalar_lea.vmem %s1851_s24, 2048  ;;  %p1677_p12 = scmp.lt.s32.totalorder %s1851_s24, %s1851_s24 }
  0x1d   :  { %p1673_p11 = scmp.ne.s32.totalorder %s1851_s24, %s1672_s20  ;;  %p1678_p13 = scmp.lt.s32.totalorder %s1672_s20, %s1672_s20 }
  0x1f   :  { %p1679_p0 = por %p1678_p13, %p1677_p12 }
  0x21   :  { %p1680_p1 = pnand %p1679_p0, %p1673_p11 }
  0x23   :  { %1683 = shalt.err (!%p1680_p1)
}
  0x24   :  { %63 = dma.hbm_to_vmem [thread:$0]  %s2057_s3, 2048, %s1851_s24, [#allocation9], %s1806_s9, %s1806_s9, %s1807_s10  }
  0x25   :  { %s1808_s22 = smov [#allocation2]   ;;  %s1809_s25 = smov [#allocation7]  }
  0x26   :  { %s21_s23 = sshll.u32 %s1808_s22, 4  ;;  %s45_s26 = sshll.u32 %s1809_s25, 4  ;;  %s22_s23 = int_to_ptr.vmem [resolvable:$true] %s21_s23  ;;  %s1888_s26 = int_to_ptr.vmem [resolvable:$true] %s45_s26 }
  0x27   :  { %s1684_s29 = scalar_lea.hbm %s2054_s0, 2048 }
  0x28   :  { %p1685_p2 = scmp.ne.s32.totalorder %s2054_s0, %s1684_s29  ;;  %p1688_p3 = scmp.lt.u32.totalorder %s1684_s29, %s2054_s0 }
  0x2a   :  { %p1690_p4 = pnand %p1688_p3, %p1685_p2 }
  0x2c   :  { %1693 = shalt.err (!%p1690_p4)
}
  0x2d   :  { %s1694_s3 = scalar_lea.vmem %s22_s23, 2048  ;;  %p1699_p6 = scmp.lt.s32.totalorder %s22_s23, %s22_s23 }
  0x2e   :  { %p1695_p5 = scmp.ne.s32.totalorder %s22_s23, %s1694_s3  ;;  %p1700_p7 = scmp.lt.s32.totalorder %s1694_s3, %s1694_s3 }
  0x30   :  { %p1701_p8 = por %p1700_p7, %p1699_p6 }
  0x32   :  { %p1702_p9 = pnand %p1701_p8, %p1695_p5 }
  0x34   :  { %1705 = shalt.err (!%p1702_p9)
}
  0x35   :  { %27 = dma.hbm_to_vmem [thread:$0]  %s2054_s0, 2048, %s22_s23, [#allocation3], %s1806_s9, %s1806_s9, %s1807_s10  }
  0x36   :  { %s1706_s15 = scalar_lea.hbm %s2056_s2, 2048 }
  0x37   :  { %p1707_p10 = scmp.ne.s32.totalorder %s2056_s2, %s1706_s15  ;;  %p1710_p11 = scmp.lt.u32.totalorder %s1706_s15, %s2056_s2 }
  0x39   :  { %p1712_p12 = pnand %p1710_p11, %p1707_p10 }
  0x3b   :  { %1715 = shalt.err (!%p1712_p12)
}
  0x3c   :  { %s1716_s20 = scalar_lea.vmem %s1888_s26, 2048  ;;  %p1721_p0 = scmp.lt.s32.totalorder %s1888_s26, %s1888_s26 }
  0x3d   :  { %p1717_p13 = scmp.ne.s32.totalorder %s1888_s26, %s1716_s20  ;;  %p1722_p1 = scmp.lt.s32.totalorder %s1716_s20, %s1716_s20 }
  0x3f   :  { %p1723_p2 = por %p1722_p1, %p1721_p0 }
  0x41   :  { %p1724_p3 = pnand %p1723_p2, %p1717_p13 }
  0x43   :  { %1727 = shalt.err (!%p1724_p3)
}
  0x44   :  { %51 = dma.hbm_to_vmem [thread:$0]  %s2056_s2, 2048, %s1888_s26, [#allocation6], %s1806_s9, %s1806_s9, %s1807_s10  }
  0x45   :  { %s1810_s21 = smov [#allocation10]   ;;  %s1811_s23 = smov [#allocation11]  }
  0x46   :  { %s69_s22 = sshll.u32 %s1810_s21, 4  ;;  %s81_s25 = sshll.u32 %s1811_s23, 4  ;;  %s70_s22 = int_to_ptr.vmem [resolvable:$true] %s69_s22  ;;  %s1925_s25 = int_to_ptr.vmem [resolvable:$true] %s81_s25 }
  0x47   :  { %s1728_s29 = scalar_lea.hbm %s2058_s4, 2048 }
  0x48   :  { %p1729_p4 = scmp.ne.s32.totalorder %s2058_s4, %s1728_s29  ;;  %p1732_p5 = scmp.lt.u32.totalorder %s1728_s29, %s2058_s4 }
  0x4a   :  { %p1734_p6 = pnand %p1732_p5, %p1729_p4 }
  0x4c   :  { %1737 = shalt.err (!%p1734_p6)
}
  0x4d   :  { %s1738_s2 = scalar_lea.vmem %s70_s22, 2048  ;;  %p1743_p8 = scmp.lt.s32.totalorder %s70_s22, %s70_s22 }
  0x4e   :  { %p1739_p7 = scmp.ne.s32.totalorder %s70_s22, %s1738_s2  ;;  %p1744_p9 = scmp.lt.s32.totalorder %s1738_s2, %s1738_s2 }
  0x50   :  { %p1745_p10 = por %p1744_p9, %p1743_p8 }
  0x52   :  { %p1746_p11 = pnand %p1745_p10, %p1739_p7 }
  0x54   :  { %1749 = shalt.err (!%p1746_p11)
}
  0x55   :  { %75 = dma.hbm_to_vmem [thread:$0]  %s2058_s4, 2048, %s70_s22, [#allocation9], %s1806_s9, %s1806_s9, %s1807_s10  }
  0x56   :  { %s1750_s13 = scalar_lea.hbm %s2059_s5, 2048 }
  0x57   :  { %p1751_p12 = scmp.ne.s32.totalorder %s2059_s5, %s1750_s13  ;;  %p1754_p13 = scmp.lt.u32.totalorder %s1750_s13, %s2059_s5 }
  0x59   :  { %p1756_p0 = pnand %p1754_p13, %p1751_p12 }
  0x5b   :  { %1759 = shalt.err (!%p1756_p0)
}
  0x5c   :  { %s1760_s18 = scalar_lea.vmem %s1925_s25, 2048  ;;  %p1765_p2 = scmp.lt.s32.totalorder %s1925_s25, %s1925_s25 }
  0x5d   :  { %p1761_p1 = scmp.ne.s32.totalorder %s1925_s25, %s1760_s18  ;;  %p1766_p3 = scmp.lt.s32.totalorder %s1760_s18, %s1760_s18 }
  0x5f   :  { %p1767_p4 = por %p1766_p3, %p1765_p2 }
  0x61   :  { %p1768_p5 = pnand %p1767_p4, %p1761_p1 }
  0x63   :  { %1771 = shalt.err (!%p1768_p5)
}
  0x64   :  { %87 = dma.hbm_to_vmem [thread:$0]  %s2059_s5, 2048, %s1925_s25, [#allocation12], %s1806_s9, %s1806_s9, %s1807_s10  }
  0x65   :  { %1794 = dma.done.wait [#allocation3], 2048  }
  0x66   :  { %1795 = vsyncadd [#allocation3], 4294965248 }
  0x67   :  { %1796 = dma.done.wait [#allocation6], 4096  }
  0x68   :  { %1797 = vsyncadd [#allocation6], 4294963200 }
  0x69   :  { %1798 = dma.done.wait [#allocation9], 4096  }
  0x6a   :  { %1799 = vsyncadd [#allocation9], 4294963200 }
  0x6b   :  { %1800 = dma.done.wait [#allocation12], 2048  }
  0x6c   :  { %1801 = vsyncadd [#allocation12], 4294965248  ;;  %v138_v0 = vld [vmem:[#allocation7] sm:$0xff]  ;;  %v139_v1 = vld [vmem:[#allocation7 + $0x8] sm:$0xff]  ;;  %vm1813_vm0 = vmmov 0   ;;  %s1815_s5 = smov [#allocation13]  }
  0x6d   :  { %v140_v2 = vld [vmem:[#allocation7 + $0x10] sm:$0xff]  ;;  %v1452_v3 = vpack.c.bf16 %v139_v1, %v138_v0  ;;  %v141_v4 = vld [vmem:[#allocation7 + $0x18] sm:$0xff]  ;;  %v142_v6 = vld [vmem:[#allocation7 + $0x20] sm:$0xff]  ;;  %s984_s9 = sshll.u32 %s1815_s5, 4  ;;  %s985_s9 = int_to_ptr.vmem [resolvable:$true] %s984_s9 }
  0x6e   :  { %v1456_v5 = vpack.c.bf16 %v141_v4, %v140_v2  ;;  %v143_v7 = vld [vmem:[#allocation7 + $0x28] sm:$0xff]  ;;  %v122_v9 = vld [vmem:[#allocation2] sm:$0xff]  ;;  %v144_v10 = vld [vmem:[#allocation7 + $0x30] sm:$0xff]  ;;  %s1772_s10 = scalar_lea.vmem %s985_s9, 16  ;;  %s1776_s20 = scalar_lea.vmem %s985_s9, 32 }
  0x6f   :  { %1453 = vmatprep.subr.bf16.mxu0 %v1452_v3  ;;  %v1460_v8 = vpack.c.bf16 %v143_v7, %v142_v6  ;;  %v145_v11 = vld [vmem:[#allocation7 + $0x38] sm:$0xff]  ;;  %1190 = vmatprep.mubr.f32.mxu0 %v122_v9  ;;  %v146_v13 = vld [vmem:[#allocation7 + $0x40] sm:$0xff]  ;;  %v147_v14 = vld [vmem:[#allocation7 + $0x48] sm:$0xff]  ;;  %p1773_p6 = scmp.ne.s32.totalorder %s985_s9, %s1772_s10  ;;  %p1777_p7 = scmp.lt.s32.totalorder %s985_s9, %s985_s9 }
  0x70   :  { %1455 = vmatpush3.bf16.msra.mxu0 %v1452_v3  ;;  %v1464_v12 = vpack.c.bf16 %v145_v11, %v144_v10  ;;  %v1468_v15 = vpack.c.bf16 %v147_v14, %v146_v13  ;;  %v148_v16 = vld [vmem:[#allocation7 + $0x50] sm:$0xff]  ;;  %v149_v17 = vld [vmem:[#allocation7 + $0x58] sm:$0xff]  ;;  %v150_v19 = vld [vmem:[#allocation7 + $0x60] sm:$0xff]  ;;  %p1778_p8 = scmp.lt.s32.totalorder %s1776_s20, %s1772_s10 }
  0x71   :  { %1457 = vmatprep.subr.bf16.mxu0 %v1456_v5  ;;  %v1472_v18 = vpack.c.bf16 %v149_v17, %v148_v16  ;;  %v151_v20 = vld [vmem:[#allocation7 + $0x68] sm:$0xff]  ;;  %v152_v22 = vld [vmem:[#allocation7 + $0x70] sm:$0xff]  ;;  %v153_v23 = vld [vmem:[#allocation7 + $0x78] sm:$0xff] }
  0x72   :  { %v1476_v21 = vpack.c.bf16 %v151_v20, %v150_v19  ;;  %v1480_v24 = vpack.c.bf16 %v153_v23, %v152_v22  ;;  %v123_v25 = vld [vmem:[#allocation2 + $0x8] sm:$0xff]  ;;  %v124_v26 = vld [vmem:[#allocation2 + $0x10] sm:$0xff]  ;;  %v125_v27 = vld [vmem:[#allocation2 + $0x18] sm:$0xff]  ;;  %p1779_p9 = por %p1778_p8, %p1777_p7 }
  0x73   :  { %v126_v28 = vld [vmem:[#allocation2 + $0x20] sm:$0xff]  ;;  %v127_v29 = vld [vmem:[#allocation2 + $0x28] sm:$0xff]  ;;  %v128_v30 = vld [vmem:[#allocation2 + $0x30] sm:$0xff] }
  0x74   :  { %1459 = vmatpush3.bf16.msra.mxu0 %v1456_v5  ;;  %v129_v31 = vld [vmem:[#allocation2 + $0x38] sm:$0xff]  ;;  %v130_v32 = vld [vmem:[#allocation2 + $0x40] sm:$0xff]  ;;  %v131_v33 = vld [vmem:[#allocation2 + $0x48] sm:$0xff]  ;;  %p1780_p10 = pnand %p1779_p9, %p1773_p6 }
  0x75   :  { %1461 = vmatprep.subr.bf16.mxu0 %v1460_v8  ;;  %v132_v34 = vld [vmem:[#allocation2 + $0x50] sm:$0xff]  ;;  %v133_v35 = vld [vmem:[#allocation2 + $0x58] sm:$0xff]  ;;  %v134_v36 = vld [vmem:[#allocation2 + $0x60] sm:$0xff] }
  0x76   :  { %v135_v37 = vld [vmem:[#allocation2 + $0x68] sm:$0xff]  ;;  %v136_v38 = vld [vmem:[#allocation2 + $0x70] sm:$0xff]  ;;  %v137_v39 = vld [vmem:[#allocation2 + $0x78] sm:$0xff] }
  0x77   :  { %v1962_v40 = vld [vmem:[#allocation5] sm:$0xff]  ;;  %v461_v42 = vld [vmem:[#allocation8 + $0x8] sm:$0xff]  ;;  %v462_v43 = vld [vmem:[#allocation8 + $0x10] sm:$0xff] }
  0x78   :  { %1463 = vmatpush3.bf16.msra.mxu0 %v1460_v8  ;;  %1246 = vmatprep.mubr.f32.mxu1 %v1962_v40  ;;  %v460_v41 = vld [vmem:[#allocation8] sm:$0xff]  ;;  %v463_v45 = vld [vmem:[#allocation8 + $0x18] sm:$0xff]  ;;  %v465_v48 = vld [vmem:[#allocation8 + $0x28] sm:$0xff] }
  0x79   :  { %1465 = vmatprep.subr.bf16.mxu0 %v1464_v12  ;;  %v1516_v44 = vpack.c.bf16 %v461_v42, %v460_v41  ;;  %v1520_v46 = vpack.c.bf16 %v463_v45, %v462_v43  ;;  %v464_v47 = vld [vmem:[#allocation8 + $0x20] sm:$0xff]  ;;  %v466_v50 = vld [vmem:[#allocation8 + $0x30] sm:$0xff]  ;;  %v467_v51 = vld [vmem:[#allocation8 + $0x38] sm:$0xff] }
  0x7a   :  { %v1524_v49 = vpack.c.bf16 %v465_v48, %v464_v47  ;;  %v1528_v52 = vpack.c.bf16 %v467_v51, %v466_v50  ;;  %v468_v53 = vld [vmem:[#allocation8 + $0x40] sm:$0xff]  ;;  %v469_v54 = vld [vmem:[#allocation8 + $0x48] sm:$0xff]  ;;  %v470_v56 = vld [vmem:[#allocation8 + $0x50] sm:$0xff] }
  0x7b   :  { %v1532_v55 = vpack.c.bf16 %v469_v54, %v468_v53  ;;  %v471_v57 = vld [vmem:[#allocation8 + $0x58] sm:$0xff]  ;;  %v472_v59 = vld [vmem:[#allocation8 + $0x60] sm:$0xff]  ;;  %v473_v60 = vld [vmem:[#allocation8 + $0x68] sm:$0xff] }
  0x7c   :  { %1467 = vmatpush3.bf16.msra.mxu0 %v1464_v12  ;;  %v1536_v58 = vpack.c.bf16 %v471_v57, %v470_v56  ;;  %v1540_v61 = vpack.c.bf16 %v473_v60, %v472_v59  ;;  %v1965_v22 = vld [vmem:[#allocation5 + $0x8] sm:$0xff]  ;;  %v1967_v23 = vld [vmem:[#allocation5 + $0x10] sm:$0xff] }
  0x7d   :  { %1469 = vmatprep.subr.bf16.mxu0 %v1468_v15 }
  0x80   :  { %1471 = vmatpush3.bf16.msra.mxu0 %v1468_v15 }
  0x81   :  { %1473 = vmatprep.subr.bf16.mxu0 %v1472_v18 }
  0x84   :  { %1475 = vmatpush3.bf16.msra.mxu0 %v1472_v18 }
  0x85   :  { %1477 = vmatprep.subr.bf16.mxu0 %v1476_v21 }
  0x88   :  { %1479 = vmatpush3.bf16.msra.mxu0 %v1476_v21 }
  0x89   :  { %1481 = vmatprep.subr.bf16.mxu0 %v1480_v24 }
  0x8c   :  { %1483 = vmatpush3.bf16.msra.mxu0 %v1480_v24  ;;  %v1971_v24 = vld [vmem:[#allocation5 + $0x18] sm:$0xff] }
  0x8d   :  { %1517 = vmatprep.subr.bf16.mxu0 %v1516_v44 }
  0x8f   :  { %1191 = vmatmul.mubr.f32.vlgmr.msra.gmra.mrb[0].mxu0 %v123_v25  ;;  %v1973_v25 = vld [vmem:[#allocation5 + $0x20] sm:$0xff] }
  0x90   :  { %1193 = vmatprep.mubr.f32.mxu0 %v124_v26  ;;  %1519 = vmatpush3.bf16.msra.mxu0 %v1516_v44  ;;  %v1977_v26 = vld [vmem:[#allocation5 + $0x28] sm:$0xff] }
  0x91   :  { %1521 = vmatprep.subr.bf16.mxu0 %v1520_v46 }
  0x93   :  { %1194 = vmatmul.mubr.f32.gmra.mrb[2].mxu0 %v125_v27  ;;  %v1979_v27 = vld [vmem:[#allocation5 + $0x30] sm:$0xff] }
  0x94   :  { %1196 = vmatprep.mubr.f32.mxu0 %v126_v28  ;;  %1523 = vmatpush3.bf16.msra.mxu0 %v1520_v46  ;;  %v1983_v28 = vld [vmem:[#allocation5 + $0x38] sm:$0xff] }
  0x95   :  { %1525 = vmatprep.subr.bf16.mxu0 %v1524_v49 }
  0x97   :  { %1197 = vmatmul.mubr.f32.gmra.mrb[4].mxu0 %v127_v29  ;;  %v1985_v29 = vld [vmem:[#allocation5 + $0x40] sm:$0xff] }
  0x98   :  { %1199 = vmatprep.mubr.f32.mxu0 %v128_v30  ;;  %1527 = vmatpush3.bf16.msra.mxu0 %v1524_v49  ;;  %v1989_v30 = vld [vmem:[#allocation5 + $0x48] sm:$0xff] }
  0x99   :  { %1529 = vmatprep.subr.bf16.mxu0 %v1528_v52 }
  0x9b   :  { %1200 = vmatmul.mubr.f32.gmra.mrb[6].mxu0 %v129_v31  ;;  %v1991_v31 = vld [vmem:[#allocation5 + $0x50] sm:$0xff] }
  0x9c   :  { %1202 = vmatprep.mubr.f32.mxu0 %v130_v32  ;;  %1531 = vmatpush3.bf16.msra.mxu0 %v1528_v52  ;;  %v1995_v32 = vld [vmem:[#allocation5 + $0x58] sm:$0xff] }
  0x9d   :  { %1533 = vmatprep.subr.bf16.mxu0 %v1532_v55 }
  0x9f   :  { %1203 = vmatmul.mubr.f32.gmra.mrb[8].mxu0 %v131_v33  ;;  %v1997_v33 = vld [vmem:[#allocation5 + $0x60] sm:$0xff] }
  0xa0   :  { %1205 = vmatprep.mubr.f32.mxu0 %v132_v34  ;;  %1535 = vmatpush3.bf16.msra.mxu0 %v1532_v55  ;;  %v2001_v34 = vld [vmem:[#allocation5 + $0x68] sm:$0xff] }
  0xa1   :  { %1537 = vmatprep.subr.bf16.mxu0 %v1536_v58 }
  0xa3   :  { %1206 = vmatmul.mubr.f32.gmra.mrb[10].mxu0 %v133_v35  ;;  %v2003_v35 = vld [vmem:[#allocation5 + $0x70] sm:$0xff] }
  0xa4   :  { %1208 = vmatprep.mubr.f32.mxu0 %v134_v36  ;;  %1539 = vmatpush3.bf16.msra.mxu0 %v1536_v58  ;;  %v2007_v36 = vld [vmem:[#allocation5 + $0x78] sm:$0xff] }
  0xa5   :  { %1541 = vmatprep.subr.bf16.mxu0 %v1540_v61 }
  0xa7   :  { %1209 = vmatmul.mubr.f32.gmra.mrb[12].mxu0 %v135_v37  ;;  %v474_v37 = vld [vmem:[#allocation8 + $0x70] sm:$0xff] }
  0xa8   :  { %1211 = vmatprep.mubr.f32.mxu0 %v136_v38  ;;  %1543 = vmatpush3.bf16.msra.mxu0 %v1540_v61  ;;  %v475_v38 = vld [vmem:[#allocation8 + $0x78] sm:$0xff] }
  0xab   :  { %1212 = vmatmul.mubr.f32.gmra.mrb[14].mxu0 %v137_v39  ;;  %v1544_v39 = vpack.c.bf16 %v475_v38, %v474_v37 }
  0xad   :  { %1545 = vmatprep.subr.bf16.mxu0 %v1544_v39 }
  0xae   :  { %1547 = vmatpush3.bf16.msra.mxu0 %v1544_v39 }
 0x162   :  { %v1192_v62 = vpop.f32.mrb[0].mxu0 }
 0x163   :  { %v220_v63 = vpop.f32.mrb[1].mxu0 }
 0x164   :  { %v1484_v0 = vpack.c.bf16 %v1192_v62, %v220_v63 }
 0x166   :  { %v1195_v1 = vpop.f32.mrb[2].mxu0  ;;  %1485 = vmatprep.subr.bf16.mxu1 %v1484_v0 }
 0x167   :  { %v230_v2 = vpop.f32.mrb[3].mxu0  ;;  %1487 = vmatpush3.bf16.msra.mxu1 %v1484_v0 }
 0x168   :  { %v1488_v3 = vpack.c.bf16 %v1195_v1, %v230_v2 }
 0x16a   :  { %v1198_v4 = vpop.f32.mrb[4].mxu0  ;;  %1489 = vmatprep.subr.bf16.mxu1 %v1488_v3 }
 0x16b   :  { %v240_v5 = vpop.f32.mrb[5].mxu0  ;;  %1491 = vmatpush3.bf16.msra.mxu1 %v1488_v3 }
 0x16c   :  { %v1492_v6 = vpack.c.bf16 %v1198_v4, %v240_v5 }
 0x16e   :  { %v1201_v7 = vpop.f32.mrb[6].mxu0  ;;  %1493 = vmatprep.subr.bf16.mxu1 %v1492_v6 }
 0x16f   :  { %v250_v8 = vpop.f32.mrb[7].mxu0  ;;  %1495 = vmatpush3.bf16.msra.mxu1 %v1492_v6 }
 0x170   :  { %v1496_v9 = vpack.c.bf16 %v1201_v7, %v250_v8 }
 0x172   :  { %v1204_v10 = vpop.f32.mrb[8].mxu0  ;;  %1497 = vmatprep.subr.bf16.mxu1 %v1496_v9 }
 0x173   :  { %v260_v11 = vpop.f32.mrb[9].mxu0  ;;  %1499 = vmatpush3.bf16.msra.mxu1 %v1496_v9 }
 0x174   :  { %v1500_v12 = vpack.c.bf16 %v1204_v10, %v260_v11 }
 0x176   :  { %v1207_v13 = vpop.f32.mrb[10].mxu0  ;;  %1501 = vmatprep.subr.bf16.mxu1 %v1500_v12 }
 0x177   :  { %v270_v14 = vpop.f32.mrb[11].mxu0  ;;  %1503 = vmatpush3.bf16.msra.mxu1 %v1500_v12 }
 0x178   :  { %v1504_v15 = vpack.c.bf16 %v1207_v13, %v270_v14 }
 0x17a   :  { %v1210_v16 = vpop.f32.mrb[12].mxu0  ;;  %1505 = vmatprep.subr.bf16.mxu1 %v1504_v15 }
 0x17b   :  { %v280_v17 = vpop.f32.mrb[13].mxu0  ;;  %1507 = vmatpush3.bf16.msra.mxu1 %v1504_v15 }
 0x17c   :  { %v1508_v18 = vpack.c.bf16 %v1210_v16, %v280_v17 }
 0x17e   :  { %v1213_v19 = vpop.f32.mrb[14].mxu0  ;;  %1509 = vmatprep.subr.bf16.mxu1 %v1508_v18 }
 0x17f   :  { %v290_v20 = vpop.f32.mrb[15].mxu0  ;;  %1511 = vmatpush3.bf16.msra.mxu1 %v1508_v18 }
 0x180   :  { %v1512_v21 = vpack.c.bf16 %v1213_v19, %v290_v20 }
 0x182   :  { %1513 = vmatprep.subr.bf16.mxu1 %v1512_v21 }
 0x183   :  { %1515 = vmatpush3.bf16.msra.mxu1 %v1512_v21 }
 0x186   :  { %1247 = vmatmul.mubr.f32.vlgmr.msra.gmra.mrb[0].mxu1 %v1965_v22 }
 0x187   :  { %1249 = vmatprep.mubr.f32.mxu1 %v1967_v23 }
 0x18a   :  { %1250 = vmatmul.mubr.f32.gmra.mrb[2].mxu1 %v1971_v24 }
 0x18b   :  { %1252 = vmatprep.mubr.f32.mxu1 %v1973_v25 }
 0x18e   :  { %1253 = vmatmul.mubr.f32.gmra.mrb[4].mxu1 %v1977_v26 }
 0x18f   :  { %1255 = vmatprep.mubr.f32.mxu1 %v1979_v27 }
 0x192   :  { %1256 = vmatmul.mubr.f32.gmra.mrb[6].mxu1 %v1983_v28 }
 0x193   :  { %1258 = vmatprep.mubr.f32.mxu1 %v1985_v29 }
 0x196   :  { %1259 = vmatmul.mubr.f32.gmra.mrb[8].mxu1 %v1989_v30 }
 0x197   :  { %1261 = vmatprep.mubr.f32.mxu1 %v1991_v31 }
 0x19a   :  { %1262 = vmatmul.mubr.f32.gmra.mrb[10].mxu1 %v1995_v32 }
 0x19b   :  { %1264 = vmatprep.mubr.f32.mxu1 %v1997_v33 }
 0x19e   :  { %1265 = vmatmul.mubr.f32.gmra.mrb[12].mxu1 %v2001_v34 }
 0x19f   :  { %1267 = vmatprep.mubr.f32.mxu1 %v2003_v35 }
 0x1a2   :  { %1268 = vmatmul.mubr.f32.gmra.mrb[14].mxu1 %v2007_v36 }
 0x1a3   :  { %1358 = vmatprep.mubr.f32.mxu1 %v1962_v40 }
 0x259   :  { %v1248_v41 = vpop.f32.mrb[0].mxu1 }
 0x25a   :  { %v365_v42 = vpop.f32.mrb[1].mxu1  ;;  %v445_v44 = vmax.f32 %v1248_v41, 0.0 }
 0x25b   :  { %v444_v43 = vmax.f32 %v365_v42, 0.0 }
 0x25d   :  { %v1251_v45 = vpop.f32.mrb[2].mxu1  ;;  %1302 = vmatprep.mubr.f32.mxu0 %v444_v43 }
 0x25e   :  { %v375_v46 = vpop.f32.mrb[3].mxu1  ;;  %1303 = vmatmul.mubr.f32.vlgmr.msra.gmra.mrb[16].mxu0 %v445_v44  ;;  %v447_v48 = vmax.f32 %v1251_v45, 0.0 }
 0x25f   :  { %v446_v47 = vmax.f32 %v375_v46, 0.0 }
 0x261   :  { %v1254_v49 = vpop.f32.mrb[4].mxu1  ;;  %1305 = vmatprep.mubr.f32.mxu0 %v446_v47 }
 0x262   :  { %v385_v50 = vpop.f32.mrb[5].mxu1  ;;  %1306 = vmatmul.mubr.f32.gmra.mrb[18].mxu0 %v447_v48  ;;  %v449_v51 = vmax.f32 %v1254_v49, 0.0  ;;  %v814_v49 = vld [vmem:[#allocation10 + $0x50] sm:$0xff] }
 0x263   :  { %v448_v40 = vmax.f32 %v385_v50, 0.0  ;;  %v815_v50 = vld [vmem:[#allocation10 + $0x58] sm:$0xff] }
 0x265   :  { %v1257_v52 = vpop.f32.mrb[6].mxu1  ;;  %1308 = vmatprep.mubr.f32.mxu0 %v448_v40  ;;  %v1596_v40 = vpack.c.bf16 %v815_v50, %v814_v49 }
 0x266   :  { %v395_v53 = vpop.f32.mrb[7].mxu1  ;;  %1309 = vmatmul.mubr.f32.gmra.mrb[20].mxu0 %v449_v51  ;;  %v451_v55 = vmax.f32 %v1257_v52, 0.0  ;;  %v816_v51 = vld [vmem:[#allocation10 + $0x60] sm:$0xff]  ;;  %v817_v52 = vld [vmem:[#allocation10 + $0x68] sm:$0xff] }
 0x267   :  { %v450_v54 = vmax.f32 %v395_v53, 0.0  ;;  %v1599_v53 = vpack.c.bf16 %v817_v52, %v816_v51 }
 0x269   :  { %v1260_v56 = vpop.f32.mrb[8].mxu1  ;;  %1311 = vmatprep.mubr.f32.mxu0 %v450_v54  ;;  %v818_v54 = vld [vmem:[#allocation10 + $0x70] sm:$0xff] }
 0x26a   :  { %v405_v57 = vpop.f32.mrb[9].mxu1  ;;  %1312 = vmatmul.mubr.f32.gmra.mrb[22].mxu0 %v451_v55  ;;  %v453_v59 = vmax.f32 %v1260_v56, 0.0  ;;  %v819_v55 = vld [vmem:[#allocation10 + $0x78] sm:$0xff] }
 0x26b   :  { %v452_v58 = vmax.f32 %v405_v57, 0.0  ;;  %v1602_v56 = vpack.c.bf16 %v819_v55, %v818_v54  ;;  %v1814_v57 = vmov 0.0  }
 0x26d   :  { %v1263_v60 = vpop.f32.mrb[10].mxu1  ;;  %1314 = vmatprep.mubr.f32.mxu0 %v452_v58  ;;  %v891_v58 = vld [vmem:[#allocation11] sm:$0xff] }
 0x26e   :  { %v415_v61 = vpop.f32.mrb[11].mxu1  ;;  %1315 = vmatmul.mubr.f32.gmra.mrb[24].mxu0 %v453_v59  ;;  %v455_v63 = vmax.f32 %v1263_v60, 0.0  ;;  %v892_v59 = vld [vmem:[#allocation11 + $0x8] sm:$0xff]  ;;  %v893_v60 = vld [vmem:[#allocation11 + $0x10] sm:$0xff] }
 0x26f   :  { %v454_v62 = vmax.f32 %v415_v61, 0.0  ;;  %v1605_v61 = vpack.c.bf16 %v892_v59, %v891_v58 }
 0x271   :  { %v1266_v0 = vpop.f32.mrb[12].mxu1  ;;  %1317 = vmatprep.mubr.f32.mxu0 %v454_v62  ;;  %v894_v62 = vld [vmem:[#allocation11 + $0x18] sm:$0xff] }
 0x272   :  { %v425_v1 = vpop.f32.mrb[13].mxu1  ;;  %1318 = vmatmul.mubr.f32.gmra.mrb[26].mxu0 %v455_v63  ;;  %v457_v3 = vmax.f32 %v1266_v0, 0.0  ;;  %v1608_v63 = vpack.c.bf16 %v894_v62, %v893_v60  ;;  %v895_v0 = vld [vmem:[#allocation11 + $0x20] sm:$0xff] }
 0x273   :  { %v456_v2 = vmax.f32 %v425_v1, 0.0  ;;  %v896_v1 = vld [vmem:[#allocation11 + $0x28] sm:$0xff] }
 0x275   :  { %v1269_v4 = vpop.f32.mrb[14].mxu1  ;;  %1320 = vmatprep.mubr.f32.mxu0 %v456_v2  ;;  %v1611_v2 = vpack.c.bf16 %v896_v1, %v895_v0 }
 0x276   :  { %v435_v5 = vpop.f32.mrb[15].mxu1  ;;  %1321 = vmatmul.mubr.f32.gmra.mrb[28].mxu0 %v457_v3  ;;  %v459_v7 = vmax.f32 %v1269_v4, 0.0  ;;  %v897_v3 = vld [vmem:[#allocation11 + $0x30] sm:$0xff]  ;;  %v898_v4 = vld [vmem:[#allocation11 + $0x38] sm:$0xff] }
 0x277   :  { %v458_v6 = vmax.f32 %v435_v5, 0.0  ;;  %v1614_v5 = vpack.c.bf16 %v898_v4, %v897_v3 }
 0x279   :  { %1323 = vmatprep.mubr.f32.mxu0 %v458_v6  ;;  %v899_v6 = vld [vmem:[#allocation11 + $0x40] sm:$0xff] }
 0x27a   :  { %1324 = vmatmul.mubr.f32.gmra.mrb[30].mxu0 %v459_v7  ;;  %v900_v7 = vld [vmem:[#allocation11 + $0x48] sm:$0xff] }
 0x27b   :  { %1414 = vmatprep.mubr.msk.f32.mxu0 %vm1813_vm0, %v1814_v57 }
 0x331   :  { %v1304_v8 = vpop.f32.mrb[16].mxu0 }
 0x332   :  { %v542_v9 = vpop.f32.mrb[17].mxu0 }
 0x333   :  { %v1548_v10 = vpack.c.bf16 %v1304_v8, %v542_v9  ;;  %v1617_v8 = vpack.c.bf16 %v900_v7, %v899_v6  ;;  %v901_v9 = vld [vmem:[#allocation11 + $0x50] sm:$0xff]  ;;  %v906_v6 = vld [vmem:[#allocation11 + $0x78] sm:$0xff] }
 0x335   :  { %v1307_v11 = vpop.f32.mrb[18].mxu0  ;;  %1549 = vmatprep.subr.bf16.mxu1 %v1548_v10 }
 0x336   :  { %v552_v12 = vpop.f32.mrb[19].mxu0  ;;  %1551 = vmatpush3.bf16.msra.mxu1 %v1548_v10  ;;  %v902_v10 = vld [vmem:[#allocation11 + $0x58] sm:$0xff] }
 0x337   :  { %v1552_v13 = vpack.c.bf16 %v1307_v11, %v552_v12  ;;  %v1620_v11 = vpack.c.bf16 %v902_v10, %v901_v9  ;;  %v903_v12 = vld [vmem:[#allocation11 + $0x60] sm:$0xff] }
 0x339   :  { %v1310_v14 = vpop.f32.mrb[20].mxu0  ;;  %1553 = vmatprep.subr.bf16.mxu1 %v1552_v13 }
 0x33a   :  { %v562_v15 = vpop.f32.mrb[21].mxu0  ;;  %1555 = vmatpush3.bf16.msra.mxu1 %v1552_v13  ;;  %v904_v13 = vld [vmem:[#allocation11 + $0x68] sm:$0xff] }
 0x33b   :  { %v1556_v16 = vpack.c.bf16 %v1310_v14, %v562_v15  ;;  %v1623_v14 = vpack.c.bf16 %v904_v13, %v903_v12 }
 0x33d   :  { %v1313_v17 = vpop.f32.mrb[22].mxu0  ;;  %1557 = vmatprep.subr.bf16.mxu1 %v1556_v16 }
 0x33e   :  { %v572_v18 = vpop.f32.mrb[23].mxu0  ;;  %1559 = vmatpush3.bf16.msra.mxu1 %v1556_v16 }
 0x33f   :  { %v1560_v19 = vpack.c.bf16 %v1313_v17, %v572_v18 }
 0x341   :  { %v1316_v20 = vpop.f32.mrb[24].mxu0  ;;  %1561 = vmatprep.subr.bf16.mxu1 %v1560_v19 }
 0x342   :  { %v582_v21 = vpop.f32.mrb[25].mxu0  ;;  %1563 = vmatpush3.bf16.msra.mxu1 %v1560_v19 }
 0x343   :  { %v1564_v37 = vpack.c.bf16 %v1316_v20, %v582_v21 }
 0x345   :  { %v1319_v38 = vpop.f32.mrb[26].mxu0  ;;  %1565 = vmatprep.subr.bf16.mxu1 %v1564_v37 }
 0x346   :  { %v592_v39 = vpop.f32.mrb[27].mxu0  ;;  %1567 = vmatpush3.bf16.msra.mxu1 %v1564_v37 }
 0x347   :  { %v1568_v41 = vpack.c.bf16 %v1319_v38, %v592_v39 }
 0x349   :  { %v1322_v42 = vpop.f32.mrb[28].mxu0  ;;  %1569 = vmatprep.subr.bf16.mxu1 %v1568_v41 }
 0x34a   :  { %v602_v43 = vpop.f32.mrb[29].mxu0  ;;  %1571 = vmatpush3.bf16.msra.mxu1 %v1568_v41 }
 0x34b   :  { %v1572_v44 = vpack.c.bf16 %v1322_v42, %v602_v43 }
 0x34d   :  { %v1325_v45 = vpop.f32.mrb[30].mxu0  ;;  %1573 = vmatprep.subr.bf16.mxu1 %v1572_v44 }
 0x34e   :  { %v612_v46 = vpop.f32.mrb[31].mxu0  ;;  %1575 = vmatpush3.bf16.msra.mxu1 %v1572_v44 }
 0x34f   :  { %v1576_v47 = vpack.c.bf16 %v1325_v45, %v612_v46 }
 0x351   :  { %1577 = vmatprep.subr.bf16.mxu1 %v1576_v47 }
 0x352   :  { %1579 = vmatpush3.bf16.msra.mxu1 %v1576_v47 }
 0x355   :  { %1359 = vmatmul.mubr.f32.vlgmr.msra.gmra.mrb[16].mxu1 %v1965_v22  ;;  %v804_v22 = vld [vmem:[#allocation10] sm:$0xff] }
 0x356   :  { %1361 = vmatprep.mubr.f32.mxu1 %v1967_v23  ;;  %v805_v23 = vld [vmem:[#allocation10 + $0x8] sm:$0xff] }
 0x359   :  { %1362 = vmatmul.mubr.f32.gmra.mrb[18].mxu1 %v1971_v24  ;;  %v1581_v24 = vpack.c.bf16 %v805_v23, %v804_v22 }
 0x35a   :  { %1364 = vmatprep.mubr.f32.mxu1 %v1973_v25  ;;  %v1812_v25 = vmov 0.0|0.0  }
 0x35b   :  { %1580 = vmatprep.subr.bf16.mxu0 %v1812_v25  ;;  %1604 = vmatprep.subr.bf16.mxu1 %v1812_v25 }
 0x35c   :  { %1582 = vmatpush3.bf16.msra.mxu0 %v1581_v24  ;;  %1606 = vmatpush3.bf16.msra.mxu1 %v1605_v61 }
 0x35d   :  { %1365 = vmatmul.mubr.f32.gmra.mrb[20].mxu1 %v1977_v26  ;;  %1583 = vmatprep.subr.bf16.mxu0 %v1812_v25  ;;  %v806_v26 = vld [vmem:[#allocation10 + $0x10] sm:$0xff] }
 0x35e   :  { %1367 = vmatprep.mubr.f32.mxu1 %v1979_v27  ;;  %v807_v27 = vld [vmem:[#allocation10 + $0x18] sm:$0xff]  ;;  %1607 = vmatprep.subr.bf16.mxu1 %v1812_v25 }
 0x360   :  { %1609 = vmatpush3.bf16.msra.mxu1 %v1608_v63 }
 0x361   :  { %1368 = vmatmul.mubr.f32.gmra.mrb[22].mxu1 %v1983_v28  ;;  %v1584_v28 = vpack.c.bf16 %v807_v27, %v806_v26  ;;  %1610 = vmatprep.subr.bf16.mxu1 %v1812_v25 }
 0x362   :  { %1370 = vmatprep.mubr.f32.mxu1 %v1985_v29  ;;  %v808_v29 = vld [vmem:[#allocation10 + $0x20] sm:$0xff] }
 0x363   :  { %1585 = vmatpush3.bf16.msra.mxu0 %v1584_v28 }
 0x364   :  { %1586 = vmatprep.subr.bf16.mxu0 %v1812_v25  ;;  %1612 = vmatpush3.bf16.msra.mxu1 %v1611_v2 }
 0x365   :  { %1371 = vmatmul.mubr.f32.gmra.mrb[24].mxu1 %v1989_v30  ;;  %v809_v30 = vld [vmem:[#allocation10 + $0x28] sm:$0xff]  ;;  %1613 = vmatprep.subr.bf16.mxu1 %v1812_v25 }
 0x366   :  { %1373 = vmatprep.mubr.f32.mxu1 %v1991_v31  ;;  %v1587_v31 = vpack.c.bf16 %v809_v30, %v808_v29 }
 0x368   :  { %1588 = vmatpush3.bf16.msra.mxu0 %v1587_v31  ;;  %1615 = vmatpush3.bf16.msra.mxu1 %v1614_v5  ;;  %v905_v5 = vld [vmem:[#allocation11 + $0x70] sm:$0xff] }
 0x369   :  { %1374 = vmatmul.mubr.f32.gmra.mrb[26].mxu1 %v1995_v32  ;;  %1589 = vmatprep.subr.bf16.mxu0 %v1812_v25  ;;  %v810_v32 = vld [vmem:[#allocation10 + $0x30] sm:$0xff]  ;;  %v1626_v7 = vpack.c.bf16 %v906_v6, %v905_v5 }
 0x36a   :  { %1376 = vmatprep.mubr.f32.mxu1 %v1997_v33  ;;  %v811_v33 = vld [vmem:[#allocation10 + $0x38] sm:$0xff]  ;;  %1616 = vmatprep.subr.bf16.mxu1 %v1812_v25 }
 0x36c   :  { %1618 = vmatpush3.bf16.msra.mxu1 %v1617_v8 }
 0x36d   :  { %1377 = vmatmul.mubr.f32.gmra.mrb[28].mxu1 %v2001_v34  ;;  %v1590_v34 = vpack.c.bf16 %v811_v33, %v810_v32  ;;  %1619 = vmatprep.subr.bf16.mxu1 %v1812_v25 }
 0x36e   :  { %1379 = vmatprep.mubr.f32.mxu1 %v2003_v35  ;;  %v812_v35 = vld [vmem:[#allocation10 + $0x40] sm:$0xff] }
 0x36f   :  { %1591 = vmatpush3.bf16.msra.mxu0 %v1590_v34 }
 0x370   :  { %1592 = vmatprep.subr.bf16.mxu0 %v1812_v25  ;;  %1621 = vmatpush3.bf16.msra.mxu1 %v1620_v11 }
 0x371   :  { %1380 = vmatmul.mubr.f32.gmra.mrb[30].mxu1 %v2007_v36  ;;  %v813_v36 = vld [vmem:[#allocation10 + $0x48] sm:$0xff]  ;;  %1622 = vmatprep.subr.bf16.mxu1 %v1812_v25 }
 0x372   :  { %v1593_v48 = vpack.c.bf16 %v813_v36, %v812_v35  ;;  %1449 = vmatprep.mubr.msk.f32.mxu1 %vm1813_vm0, %v1814_v57 }
 0x374   :  { %1594 = vmatpush3.bf16.msra.mxu0 %v1593_v48  ;;  %1624 = vmatpush3.bf16.msra.mxu1 %v1623_v14 }
 0x375   :  { %1595 = vmatprep.subr.bf16.mxu0 %v1812_v25  ;;  %1625 = vmatprep.subr.bf16.mxu1 %v1812_v25 }
 0x378   :  { %1597 = vmatpush3.bf16.msra.mxu0 %v1596_v40  ;;  %1627 = vmatpush3.bf16.msra.mxu1 %v1626_v7 }
 0x379   :  { %1598 = vmatprep.subr.bf16.mxu0 %v1812_v25 }
 0x37c   :  { %1600 = vmatpush3.bf16.msra.mxu0 %v1599_v53 }
 0x37d   :  { %1601 = vmatprep.subr.bf16.mxu0 %v1812_v25 }
 0x380   :  { %1603 = vmatpush3.bf16.msra.mxu0 %v1602_v56 }
 0x428   :  { %v1360_v15 = vpop.f32.mrb[16].mxu1 }
 0x429   :  { %v767_v16 = vmax.f32 %v1360_v15, 0.0  ;;  %v687_v17 = vpop.f32.mrb[17].mxu1 }
 0x42a   :  { %v766_v18 = vmax.f32 %v687_v17, 0.0 }
 0x42c   :  { %v782_v19 = vadd.f32 %v767_v16, %v766_v18  ;;  %v1363_v20 = vpop.f32.mrb[18].mxu1 }
 0x42d   :  { %v697_v21 = vpop.f32.mrb[19].mxu1  ;;  %v769_v38 = vmax.f32 %v1363_v20, 0.0 }
 0x42e   :  { %v768_v37 = vmax.f32 %v697_v21, 0.0 }
 0x430   :  { %v783_v39 = vadd.f32 %v782_v19, %v768_v37  ;;  %v1366_v41 = vpop.f32.mrb[20].mxu1 }
 0x431   :  { %v707_v42 = vpop.f32.mrb[21].mxu1  ;;  %v771_v45 = vmax.f32 %v1366_v41, 0.0 }
 0x432   :  { %v770_v43 = vmax.f32 %v707_v42, 0.0  ;;  %v784_v44 = vadd.f32 %v783_v39, %v769_v38 }
 0x434   :  { %v785_v46 = vadd.f32 %v784_v44, %v770_v43  ;;  %v1369_v47 = vpop.f32.mrb[22].mxu1 }
 0x435   :  { %v717_v22 = vpop.f32.mrb[23].mxu1  ;;  %v773_v25 = vmax.f32 %v1369_v47, 0.0 }
 0x436   :  { %v772_v23 = vmax.f32 %v717_v22, 0.0  ;;  %v786_v24 = vadd.f32 %v785_v46, %v771_v45 }
 0x438   :  { %v787_v26 = vadd.f32 %v786_v24, %v772_v23  ;;  %v1372_v27 = vpop.f32.mrb[24].mxu1 }
 0x439   :  { %v727_v28 = vpop.f32.mrb[25].mxu1  ;;  %v775_v31 = vmax.f32 %v1372_v27, 0.0 }
 0x43a   :  { %v774_v29 = vmax.f32 %v727_v28, 0.0  ;;  %v788_v30 = vadd.f32 %v787_v26, %v773_v25 }
 0x43c   :  { %v789_v32 = vadd.f32 %v788_v30, %v774_v29  ;;  %v1375_v33 = vpop.f32.mrb[26].mxu1 }
 0x43d   :  { %v737_v34 = vpop.f32.mrb[27].mxu1  ;;  %v777_v48 = vmax.f32 %v1375_v33, 0.0 }
 0x43e   :  { %v776_v35 = vmax.f32 %v737_v34, 0.0  ;;  %v790_v36 = vadd.f32 %v789_v32, %v775_v31 }
 0x440   :  { %v791_v49 = vadd.f32 %v790_v36, %v776_v35  ;;  %v1378_v50 = vpop.f32.mrb[28].mxu1 }
 0x441   :  { %v747_v40 = vpop.f32.mrb[29].mxu1  ;;  %v779_v53 = vmax.f32 %v1378_v50, 0.0 }
 0x442   :  { %v778_v51 = vmax.f32 %v747_v40, 0.0  ;;  %v792_v52 = vadd.f32 %v791_v49, %v777_v48 }
 0x444   :  { %v793_v54 = vadd.f32 %v792_v52, %v778_v51  ;;  %v1381_v55 = vpop.f32.mrb[30].mxu1 }
 0x445   :  { %v757_v56 = vpop.f32.mrb[31].mxu1  ;;  %v781_v59 = vmax.f32 %v1381_v55, 0.0 }
 0x446   :  { %v780_v57 = vmax.f32 %v757_v56, 0.0  ;;  %v794_v58 = vadd.f32 %v793_v54, %v779_v53 }
 0x448   :  { %v795_v60 = vadd.f32 %v794_v58, %v780_v57 }
 0x44a   :  { %v796_v61 = vadd.f32 %v795_v60, %v781_v59 }
 0x44c   :  { %v797_v62 = vrot.slane %v796_v61, 4 }
 0x44e   :  { %v798_v63 = vadd.f32 %v797_v62, %v796_v61 }
 0x450   :  { %v799_v0 = vrot.slane %v798_v63, 2 }
 0x452   :  { %v800_v1 = vadd.f32 %v799_v0, %v798_v63 }
 0x454   :  { %v801_v2 = vrot.slane %v800_v1, 1 }
 0x456   :  { %v802_v3 = vadd.f32 %v801_v2, %v800_v1 }
 0x458   :  { %v803_v4 = vmul.f32 0.125, %v802_v3 }
 0x45a   :  { %1415 = vmatmul.mubr.f32.vlgmr.msra.gmra.mrb[32].mxu0 %v803_v4 }
 0x52d   :  { %v886_v8 = vpop.f32.mrb[32].mxu0 }
 0x52e   :  { %v890_v9 = vmax.f32 %v886_v8, 0.0  ;;  %v1416_v10 = vpop.f32.mrb[33].mxu0 }
 0x530   :  { %1450 = vmatmul.mubr.f32.vlgmr.msra.gmra.mrb[32].mxu1 %v890_v9 }
 0x603   :  { %v973_v11 = vpop.f32.mrb[32].mxu1 }
 0x604   :  { %977 = vst [vmem:[#allocation13] sm:$0x1] %v973_v11  ;;  %v1451_v12 = vpop.f32.mrb[33].mxu1 }
 0x605   :  { %1783 = shalt.err (!%p1780_p10)
}
 0x606   :  { %s1784_s21 = scalar_lea.hbm %s2060_s6, 16 }
 0x607   :  { %p1785_p11 = scmp.ne.s32.totalorder %s2060_s6, %s1784_s21  ;;  %p1788_p12 = scmp.lt.u32.totalorder %s1784_s21, %s2060_s6 }
 0x609   :  { %p1790_p13 = pnand %p1788_p12, %p1785_p11 }
 0x60b   :  { %1793 = shalt.err (!%p1790_p13)
}
 0x60c   :  { %987 = dma.vmem_to_hbm [thread:$0]  %s985_s9, 16, %s2060_s6, [#allocation4]  }
 0x60d   :  { %1802 = dma.done.wait [#allocation4], 16  }
 0x60e   :  { %1803 = vsyncadd [#allocation4], 4294967280 }
 0x60f   :  { %991 = vsyncpa [#allocation3], 1 }
 0x610   :  { %992 = vsyncpa [#allocation6], 1 }
 0x611   :  { %993 = vsyncpa [#allocation9], 1 }
 0x612   :  { %994 = vsyncpa [#allocation12], 1 }
 0x613   :  { %995 = vsyncpa [#allocation4], 1 }

</bundles_post_ra>
